<compile_context>
chip_gen: v5e
topology: v5e:2x2
jax: 0.10.0
libtpu: 0.0.40
codegen_flags: <defaults>
</compile_context>

<pallas_src>
import jax
import jax.numpy as jnp
from jax.experimental import pallas as pl
from jax.experimental.pallas import tpu as pltpu

EMBED = 32            # per-head embedding width
HIDDEN = 64           # fc hidden width
DUMMY = 128           # dummy dti / fmri embedding width (hard-coded in module)
OUT = 1               # final output width
IN_F = 17             # total global features
HEADS_OUT = 4 * EMBED  # 128 = width of the fused head output

META_F, BIO_F, DTI_F, FMRI_F = 2, 7, 4, 4   # feature splits of the 17 inputs

DEFAULT_TILE_B = 2048  # fits comfortably in VMEM on v5e/v6e/v7x


def _round_up(x, m):
    return ((x + m - 1) // m) * m


# --------------------------------------------------------------------------
# Kernel: one fused head matmul + fc1 + VPU reduction for the N=1 projection.
# --------------------------------------------------------------------------
def _global_only_kernel(x_ref, wh_ref, bh_ref, w1_ref, b1_ref, w2_ref, b2_ref,
                        out_ref):
    # Fused heads: (TILE_B,17) @ (17,128) + bias, ReLU.
    head = jnp.maximum(
        jnp.dot(x_ref[...], wh_ref[...], preferred_element_type=jnp.float32)
        + bh_ref[...], 0.0)

    # fc1 restricted to the 128 active rows (dummy-zero rows dropped).
    h = jnp.maximum(
        jnp.dot(head, w1_ref[...], preferred_element_type=jnp.float32)
        + b1_ref[...], 0.0)

    # fc2 (N=1): VPU multiply + cross-lane sum instead of an MXU matmul.
    out_ref[...] = (jnp.sum(h * w2_ref[...], axis=-1, keepdims=True)
                    + b2_ref[...])


# --------------------------------------------------------------------------
# Parameters (stand-in for original_model weights) and the fused layout.
# --------------------------------------------------------------------------
def init_params(key):
    """Deterministic parameter init in the original (per-head) layout."""
    ks = jax.random.split(key, 12)

    def lin(kw, kb, n_in, n_out):
        scale = 1.0 / jnp.sqrt(jnp.float32(n_in))
        w = jax.random.uniform(kw, (n_in, n_out), jnp.float32, -scale, scale)
        b = jax.random.uniform(kb, (1, n_out), jnp.float32, -scale, scale)
        return w, b

    wm, bm = lin(ks[0], ks[1], META_F, EMBED)
    wb, bb = lin(ks[2], ks[3], BIO_F, EMBED)
    wd, bd = lin(ks[4], ks[5], DTI_F, EMBED)
    wf, bf = lin(ks[6], ks[7], FMRI_F, EMBED)
    w1, b1 = lin(ks[8], ks[9], 2 * DUMMY + 4 * EMBED, HIDDEN)
    w2, b2 = lin(ks[10], ks[11], HIDDEN, OUT)
    return (wm, bm, wb, bb, wd, bd, wf, bf, w1, b1, w2, b2)


def fuse_params(params):
    """Build the fused kernel parameters (exact algebraic rearrangement)."""
    (wm, bm, wb, bb, wd, bd, wf, bf, w1, b1, w2, b2) = params

    # Block-diagonal (17, 128) head weight: each head's weight occupies its
    # own row-band (feature slice) and column-band (embedding slice).
    wh = jnp.zeros((IN_F, HEADS_OUT), jnp.float32)
    wh = wh.at[0:2, 0:32].set(wm)
    wh = wh.at[2:9, 32:64].set(wb)
    wh = wh.at[9:13, 64:96].set(wd)
    wh = wh.at[13:17, 96:128].set(wf)
    bh = jnp.concatenate([bm, bb, bd, bf], axis=1)          # (1, 128)

    # Only the rows of w1 that multiply the non-dummy embeddings matter.
    w1a = w1[2 * DUMMY:, :]                                  # (128, 64)

    # fc2 weight as a lane row for the VPU reduction.
    w2r = jnp.transpose(w2)                                  # (1, 64)

    return (wh, bh, w1a, b1, w2r, b2)


# --------------------------------------------------------------------------
# Wrapper: batch-tiled pallas_call with weights held VMEM-resident.
# --------------------------------------------------------------------------
def global_only_forward(global_feats, fused_params, *, tile_b=DEFAULT_TILE_B):
    assert global_feats.shape[1] == IN_F
    B = global_feats.shape[0]
    wh, bh, w1a, b1, w2r, b2 = fused_params

    # Pick a batch tile (multiple of 8 sublanes), pad B up to a multiple of it.
    tb = min(tile_b, _round_up(B, 8))
    Bp = _round_up(B, tb)
    x = global_feats
    if Bp != B:
        x = jnp.pad(x, ((0, Bp - B), (0, 0)))
    grid = (Bp // tb,)

    const = lambda i: (0, 0)  # weights/biases: same block every grid step
    out = pl.pallas_call(
        _global_only_kernel,
        out_shape=jax.ShapeDtypeStruct((Bp, OUT), jnp.float32),
        grid=grid,
        in_specs=[
            pl.BlockSpec((tb, IN_F), lambda i: (i, 0)),          # x stream
            pl.BlockSpec((IN_F, HEADS_OUT), const),              # fused head W
            pl.BlockSpec((1, HEADS_OUT), const),                 # fused head b
            pl.BlockSpec((HEADS_OUT, HIDDEN), const),            # fc1 W (active)
            pl.BlockSpec((1, HIDDEN), const),                    # fc1 b
            pl.BlockSpec((1, HIDDEN), const),                    # fc2 W row
            pl.BlockSpec((1, OUT), const),                       # fc2 b
        ],
        out_specs=pl.BlockSpec((tb, OUT), lambda i: (i, 0)),
        compiler_params=pltpu.CompilerParams(
            dimension_semantics=("parallel",),   # shard batch over v7x's 2 TCs
            vmem_limit_bytes=32 * 1024 * 1024,   # explicit; far above footprint
        ),
    )(x, wh, bh, w1a, b1, w2r, b2)

    return out[:B]


# --------------------------------------------------------------------------
# Pure-JAX reference (un-fused, matches the PyTorch forward exactly).
# --------------------------------------------------------------------------
def _reference_forward(global_feats, params):
    (wm, bm, wb, bb, wd, bd, wf, bf, w1, b1, w2, b2) = params
    relu = lambda v: jnp.maximum(v, 0.0)
    meta = global_feats[:, 0:2]
    bio = global_feats[:, 2:9]
    dti = global_feats[:, 9:13]
    fmri = global_feats[:, 13:17]
    meta_e = relu(meta @ wm + bm)
    bio_e = relu(bio @ wb + bb)
    dti_e = relu(dti @ wd + bd)
    fmri_e = relu(fmri @ wf + bf)
    dummy = jnp.zeros((global_feats.shape[0], DUMMY), jnp.float32)
    combined = jnp.concatenate([dummy, dummy, meta_e, bio_e, dti_e, fmri_e],
                               axis=1)
    h = relu(combined @ w1 + b1)
    return h @ w2 + b2


if __name__ == "__main__":
    key = jax.random.PRNGKey(0)
    k_x, k_p = jax.random.split(key)

    B = 8
    global_feats = jax.random.normal(k_x, (B, IN_F), dtype=jnp.float32)
    params = init_params(k_p)
    fused = fuse_params(params)

    out = global_only_forward(global_feats, fused)
    out = jax.block_until_ready(out)

    ref = _reference_forward(global_feats, params)
    assert out.shape == (B, OUT)
    assert jnp.allclose(out, ref, atol=1e-4, rtol=1e-4)

    print("KERNEL_OK")
</pallas_src>

<mosaic_0001>
module attributes {stable_mosaic.version = 11 : i64} {
  func.func @_global_only_kernel(%arg0: i32, %arg1: memref<8x17xf32, #tpu.memory_space<vmem>>, %arg2: memref<17x128xf32, #tpu.memory_space<vmem>>, %arg3: memref<1x128xf32, #tpu.memory_space<vmem>>, %arg4: memref<128x64xf32, #tpu.memory_space<vmem>>, %arg5: memref<1x64xf32, #tpu.memory_space<vmem>>, %arg6: memref<1x64xf32, #tpu.memory_space<vmem>>, %arg7: memref<1x1xf32, #tpu.memory_space<vmem>>, %arg8: memref<8x1xf32, #tpu.memory_space<vmem>>) attributes {dimension_semantics = [#tpu.dimension_semantics<parallel>], iteration_bounds = array<i64: 1>, scalar_prefetch = 0 : i64, scratch_operands = 0 : i64, tpu.core_type = #tpu.core_type<tc>, window_params = [{transform_indices = @transform_0, window_bounds = array<i64: 8, 17>}, {pipeline_mode = #tpu.pipeline_mode<synchronous>, transform_indices = @transform_1, window_bounds = array<i64: 17, 128>}, {pipeline_mode = #tpu.pipeline_mode<synchronous>, transform_indices = @transform_2, window_bounds = array<i64: 1, 128>}, {pipeline_mode = #tpu.pipeline_mode<synchronous>, transform_indices = @transform_3, window_bounds = array<i64: 128, 64>}, {pipeline_mode = #tpu.pipeline_mode<synchronous>, transform_indices = @transform_4, window_bounds = array<i64: 1, 64>}, {pipeline_mode = #tpu.pipeline_mode<synchronous>, transform_indices = @transform_5, window_bounds = array<i64: 1, 64>}, {pipeline_mode = #tpu.pipeline_mode<synchronous>, transform_indices = @transform_6, window_bounds = array<i64: 1, 1>}, {transform_indices = @transform_7, window_bounds = array<i64: 8, 1>}]} {
    %c0 = arith.constant 0 : index
    %c0_0 = arith.constant 0 : index
    %0 = vector.load %arg1[%c0, %c0_0] : memref<8x17xf32, #tpu.memory_space<vmem>>, vector<8x17xf32>
    %c0_1 = arith.constant 0 : index
    %c0_2 = arith.constant 0 : index
    %1 = vector.load %arg2[%c0_1, %c0_2] : memref<17x128xf32, #tpu.memory_space<vmem>>, vector<17x128xf32>
    %cst = arith.constant dense<0.000000e+00> : vector<8x128xf32>
    %2 = tpu.matmul %0, %1, %cst {dimension_numbers = #tpu.dot_dimension_numbers<[1], [0], [0], [1], [0, 0, 1, 1], [], []>} : vector<8x17xf32>, vector<17x128xf32>, vector<8x128xf32> -> vector<8x128xf32>
    %c0_3 = arith.constant 0 : index
    %c0_4 = arith.constant 0 : index
    %3 = vector.load %arg3[%c0_3, %c0_4] : memref<1x128xf32, #tpu.memory_space<vmem>>, vector<1x128xf32>
    %4 = vector.broadcast %3 : vector<1x128xf32> to vector<8x128xf32>
    %5 = arith.addf %2, %4 : vector<8x128xf32>
    %cst_5 = arith.constant 0.000000e+00 : f32
    %6 = vector.broadcast %cst_5 : f32 to vector<8x128xf32>
    %7 = arith.maximumf %5, %6 : vector<8x128xf32>
    %c0_6 = arith.constant 0 : index
    %c0_7 = arith.constant 0 : index
    %8 = vector.load %arg4[%c0_6, %c0_7] : memref<128x64xf32, #tpu.memory_space<vmem>>, vector<128x64xf32>
    %cst_8 = arith.constant dense<0.000000e+00> : vector<8x64xf32>
    %9 = tpu.matmul %7, %8, %cst_8 {dimension_numbers = #tpu.dot_dimension_numbers<[1], [0], [0], [1], [0, 0, 1, 1], [], []>} : vector<8x128xf32>, vector<128x64xf32>, vector<8x64xf32> -> vector<8x64xf32>
    %c0_9 = arith.constant 0 : index
    %c0_10 = arith.constant 0 : index
    %10 = vector.load %arg5[%c0_9, %c0_10] : memref<1x64xf32, #tpu.memory_space<vmem>>, vector<1x64xf32>
    %11 = vector.broadcast %10 : vector<1x64xf32> to vector<8x64xf32>
    %12 = arith.addf %9, %11 : vector<8x64xf32>
    %cst_11 = arith.constant 0.000000e+00 : f32
    %13 = vector.broadcast %cst_11 : f32 to vector<8x64xf32>
    %14 = arith.maximumf %12, %13 : vector<8x64xf32>
    %c0_12 = arith.constant 0 : index
    %c0_13 = arith.constant 0 : index
    %15 = vector.load %arg6[%c0_12, %c0_13] : memref<1x64xf32, #tpu.memory_space<vmem>>, vector<1x64xf32>
    %16 = vector.broadcast %15 : vector<1x64xf32> to vector<8x64xf32>
    %17 = arith.mulf %14, %16 : vector<8x64xf32>
    %cst_14 = arith.constant dense<0.000000e+00> : vector<8xf32>
    %18 = vector.multi_reduction <add>, %17, %cst_14 [1] : vector<8x64xf32> to vector<8xf32>
    %19 = vector.shape_cast %18 : vector<8xf32> to vector<8x1xf32>
    %c0_15 = arith.constant 0 : index
    %c0_16 = arith.constant 0 : index
    %20 = vector.load %arg7[%c0_15, %c0_16] : memref<1x1xf32, #tpu.memory_space<vmem>>, vector<1x1xf32>
    %21 = vector.broadcast %20 : vector<1x1xf32> to vector<8x1xf32>
    %22 = arith.addf %19, %21 : vector<8x1xf32>
    %c0_17 = arith.constant 0 : index
    %c0_18 = arith.constant 0 : index
    %23 = vector.load %arg8[%c0_17, %c0_18] : memref<8x1xf32, #tpu.memory_space<vmem>>, vector<8x1xf32>
    tpu.vector_store %arg8[%c0_17, %c0_18], %22 {strides = array<i32>} : memref<8x1xf32, #tpu.memory_space<vmem>>, vector<8x1xf32>,
    return
  }
  func.func @transform_0(%arg0: i32) -> (i32, i32) {
    %c0_i32 = arith.constant 0 : i32
    %c0_i32_0 = arith.constant 0 : i32
    return %arg0, %c0_i32 : i32, i32
  }
  func.func @transform_1(%arg0: i32) -> (i32, i32) {
    %c0_i32 = arith.constant 0 : i32
    %c0_i32_0 = arith.constant 0 : i32
    %c0_i32_1 = arith.constant 0 : i32
    return %c0_i32, %c0_i32_0 : i32, i32
  }
  func.func @transform_2(%arg0: i32) -> (i32, i32) {
    %c0_i32 = arith.constant 0 : i32
    %c0_i32_0 = arith.constant 0 : i32
    %c0_i32_1 = arith.constant 0 : i32
    return %c0_i32, %c0_i32_0 : i32, i32
  }
  func.func @transform_3(%arg0: i32) -> (i32, i32) {
    %c0_i32 = arith.constant 0 : i32
    %c0_i32_0 = arith.constant 0 : i32
    %c0_i32_1 = arith.constant 0 : i32
    return %c0_i32, %c0_i32_0 : i32, i32
  }
  func.func @transform_4(%arg0: i32) -> (i32, i32) {
    %c0_i32 = arith.constant 0 : i32
    %c0_i32_0 = arith.constant 0 : i32
    %c0_i32_1 = arith.constant 0 : i32
    return %c0_i32, %c0_i32_0 : i32, i32
  }
  func.func @transform_5(%arg0: i32) -> (i32, i32) {
    %c0_i32 = arith.constant 0 : i32
    %c0_i32_0 = arith.constant 0 : i32
    %c0_i32_1 = arith.constant 0 : i32
    return %c0_i32, %c0_i32_0 : i32, i32
  }
  func.func @transform_6(%arg0: i32) -> (i32, i32) {
    %c0_i32 = arith.constant 0 : i32
    %c0_i32_0 = arith.constant 0 : i32
    %c0_i32_1 = arith.constant 0 : i32
    return %c0_i32, %c0_i32_0 : i32, i32
  }
  func.func @transform_7(%arg0: i32) -> (i32, i32) {
    %c0_i32 = arith.constant 0 : i32
    %c0_i32_0 = arith.constant 0 : i32
    return %arg0, %c0_i32 : i32, i32
  }
}

</mosaic_0001>

<bundles_post_ra>
// kernel: tpu_custom_call.1
= control target key start
LH: loop header
LB: loop body
LE: loop exit
PB: predicated region body
PF: predicated region fallthrough
CT: control target
= control target key end

     0   :  { %vm40_vm0 = vcmask 1040384   ;;  %vm36_vm1 = vcmask 138240   ;;  %vm111_vm2 = vcmask 523264   ;;  %vm120_vm3 = vcmask 7168   ;;  %s247_s1 = inlined_call_operand.vmem [shape: f32[17,128], index: 1, kind: input, shape index: {}]   ;;  %s248_s3 = inlined_call_operand.vmem [shape: f32[128,64], index: 3, kind: input, shape index: {}]   ;;  %s249_s0 = inlined_call_operand.vmem [shape: f32[8,17], index: 0, kind: input, shape index: {}]   ;;  %s250_s2 = inlined_call_operand.vmem [shape: f32[1,128], index: 2, kind: input, shape index: {}]   ;;  %s251_s4 = inlined_call_operand.vmem [shape: f32[1,64], index: 4, kind: input, shape index: {}]   ;;  %s252_s5 = inlined_call_operand.vmem [shape: f32[1,64], index: 5, kind: input, shape index: {}]   ;;  %s253_s6 = inlined_call_operand.<no memory space> [shape: f32[1,1], index: 6, kind: input, shape index: {}]   ;;  %s254_s7 = inlined_call_operand.vmem [shape: f32[8,1], index: 7, kind: output, shape index: {}]  }
   0x1   :  { %v31_v0 = vld [vmem:[%s247_s1 + $0x10] sm:$0x1]  ;;  %v30_v1 = vld [vmem:[%s247_s1 + $0x8] sm:$0xff]  ;;  %v80_v2 = vld [vmem:[%s248_s3 + $0x78] sm:$0xff]  ;;  %v12_v24 = vstv %s253_s6 }
   0x2   :  { %126 = vmatpush.msk.msra.mxu0 %vm40_vm0, %v31_v0  ;;  %v79_v3 = vld [vmem:[%s248_s3 + $0x70] sm:$0xff]  ;;  %v29_v4 = vld [vmem:[%s247_s1] sm:$0xff]  ;;  %85 = vmatpush.msra.mxu1 %v80_v2  ;;  %v78_v6 = vld [vmem:[%s248_s3 + $0x68] sm:$0xff]  ;;  %13 = vst [vmem:[#allocation2] sm:$0x1] %v12_v24 }
   0x3   :  { %v28_v5 = vld [vmem:[%s249_s0] sm:$0xff]  ;;  %v76_v8 = vld [vmem:[%s248_s3 + $0x58] sm:$0xff]  ;;  %v75_v9 = vld [vmem:[%s248_s3 + $0x50] sm:$0xff] }
   0x4   :  { %58 = vmatpush.msra.mxu0 %v30_v1  ;;  %86 = vmatpush.msra.mxu1 %v79_v3  ;;  %v77_v7 = vld [vmem:[%s248_s3 + $0x60] sm:$0xff]  ;;  %v74_v10 = vld [vmem:[%s248_s3 + $0x48] sm:$0xff]  ;;  %v72_v12 = vld [vmem:[%s248_s3 + $0x38] sm:$0xff] }
   0x5   :  { %v73_v11 = vld [vmem:[%s248_s3 + $0x40] sm:$0xff]  ;;  %v71_v13 = vld [vmem:[%s248_s3 + $0x30] sm:$0xff]  ;;  %v70_v14 = vld [vmem:[%s248_s3 + $0x28] sm:$0xff] }
   0x6   :  { %59 = vmatpush.msra.mxu0 %v29_v4  ;;  %87 = vmatpush.msra.mxu1 %v78_v6  ;;  %v69_v15 = vld [vmem:[%s248_s3 + $0x20] sm:$0xff]  ;;  %v68_v16 = vld [vmem:[%s248_s3 + $0x18] sm:$0xff]  ;;  %v67_v17 = vld [vmem:[%s248_s3 + $0x10] sm:$0xff] }
   0x7   :  { %127 = vmatmul.msk.f32.vlgmr.msra.gmra.mxu0 %vm36_vm1, %v28_v5  ;;  %v66_v18 = vld [vmem:[%s248_s3 + $0x8] sm:$0xff]  ;;  %v65_v19 = vld [vmem:[%s248_s3] sm:$0xff] }
   0x8   :  { %88 = vmatpush.msra.mxu1 %v77_v7  ;;  %v128_v20 = vld [vmem:[%s250_s2] ss:$0 sm:$0xff] }
   0x9   :  { %v129_v25 = vld [vmem:[%s251_s4] ss:$0 sm:$0xff] }
   0xa   :  { %89 = vmatpush.msra.mxu1 %v76_v8  ;;  %v130_v28 = vld [vmem:[%s252_s5] ss:$0 sm:$0xff] }
   0xb   :  { %v131_v32 = vld [vmem:[#allocation2] ss:$0 sm:$0xff] }
   0xc   :  { %90 = vmatpush.msra.mxu1 %v75_v9 }
   0xe   :  { %91 = vmatpush.msra.mxu1 %v74_v10 }
  0x10   :  { %92 = vmatpush.msra.mxu1 %v73_v11 }
  0x12   :  { %93 = vmatpush.msra.mxu1 %v72_v12 }
  0x14   :  { %94 = vmatpush.msra.mxu1 %v71_v13 }
  0x16   :  { %95 = vmatpush.msra.mxu1 %v70_v14 }
  0x18   :  { %96 = vmatpush.msra.mxu1 %v69_v15 }
  0x1a   :  { %97 = vmatpush.msra.mxu1 %v68_v16 }
  0x1c   :  { %98 = vmatpush.msra.mxu1 %v67_v17 }
  0x1e   :  { %99 = vmatpush.msra.mxu1 %v66_v18 }
  0x20   :  { %100 = vmatpush.msra.mxu1 %v65_v19 }
  0x84   :  { %v61_v21 = vpop.f32.mrf.mxu0 }
  0x85   :  { %v62_v22 = vadd.f32 %v128_v20, %v61_v21 }
  0x87   :  { %v64_v23 = vmax.f32 %v62_v22, 0.0 }
  0x89   :  { %101 = vmatmul.f32.vlgmr.msra.gmra.mxu1 %v64_v23 }
 0x106   :  { %v102_v26 = vpop.f32.mrf.mxu1 }
 0x107   :  { %v103_v27 = vadd.f32 %v129_v25, %v102_v26 }
 0x109   :  { %v105_v29 = vmax.f32 %v103_v27, 0.0 }
 0x10b   :  { %v110_v30 = vmul.f32 %v130_v28, %v105_v29 }
 0x10d   :  { %v112_v31 = vsel %vm111_vm2, %v110_v30, 0.0 }
 0x10e   :  { %113 = vadd.xlane.f32.xlu0 %v112_v31 }
 0x181   :  { %v114_v33 = vpop.xlane.xlu0 %113 }
 0x182   :  { %v119_v34 = vadd.f32 %v131_v32, %v114_v33 }
 0x184   :  { %121 = vst.msk [vmem:[%s254_s7] sm:$0xff] %vm120_vm3, %v119_v34 }

</bundles_post_ra>
